<compile_context>
chip_gen: v7x
topology: tpu7x:2x2x1
jax: 0.10.0
libtpu: 0.0.40
codegen_flags: <defaults>
</compile_context>

<pallas_src>
import functools

import jax
import jax.numpy as jnp
from jax.experimental import pallas as pl
from jax.experimental.pallas import tpu as pltpu


def _round_up(n, m):
    return ((n + m - 1) // m) * m


def rnd_kernel(x_ref, w1_ref, b1_ref, w2_ref, b2_ref, w3_ref, b3_ref, o_ref,
               *, bf16_matmul):
    """One batch tile, feature-major layout.

    x_ref : [F_in, TB]   (F_in = 2, batch on the lane axis)
    w1_ref: [H, F_in]    b1_ref: [H, 1]
    w2_ref: [H, H]       b2_ref: [H, 1]
    w3_ref: [H, 1]       b3_ref: [1, 1]
    o_ref : [1, TB]      lane-dense output
    """
    x = x_ref[...]                        # [F_in, TB]
    w1 = w1_ref[...]                      # [H, F_in]
    f_in = x_ref.shape[0]

    # Layer 1 (K = F_in = 2): a few VPU multiply-adds instead of a padded MXU
    # matmul.  Unrolled over the (static, tiny) feature dim.
    acc = w1[:, 0:1] * x[0:1, :] + b1_ref[...]
    for f in range(1, f_in):
        acc = acc + w1[:, f:f + 1] * x[f:f + 1, :]
    h1 = jnp.maximum(acc, 0.0)            # [H, TB]

    # Layer 2 (32 x 32): the only MXU matmul; batch stays on the lanes.
    # bf16 operands with f32 accumulation -> one MXU pass (K=32 keeps accuracy).
    w2 = w2_ref[...]
    if bf16_matmul:
        h2 = jnp.dot(w2.astype(jnp.bfloat16), h1.astype(jnp.bfloat16),
                     preferred_element_type=jnp.float32)
    else:
        h2 = jnp.dot(w2, h1, preferred_element_type=jnp.float32)
    h2 = jnp.maximum(h2 + b2_ref[...], 0.0)   # [H, TB]

    # Layer 3 (N = 1): VPU multiply + sublane (XLU) reduce instead of MXU.
    y = jnp.sum(h2 * w3_ref[...], axis=0, keepdims=True) + b3_ref[...]
    o_ref[...] = y                        # [1, TB]  (lane-dense store)


def rnd_forward_t(xt, params, *, max_batch_tile=16384, bf16_matmul=True):
    """Feature-major entry point (no wrapper-side HBM relayout of x).

    xt: [F_in, B] float32 (batch on the trailing axis).
    params: dict of w1,b1,w2,b2,w3,b3 with weights stored as [in, out].
    Returns [1, B] float32.
    """
    w1, b1 = params["w1"], params["b1"]
    w2, b2 = params["w2"], params["b2"]
    w3, b3 = params["w3"], params["b3"]

    xt = jnp.asarray(xt, jnp.float32)
    F, B = xt.shape
    H = w1.shape[1]

    # Feature-major parameter layout for the kernel (tiny; resident in VMEM).
    w1t = jnp.asarray(w1, jnp.float32).T          # [H, F]
    w2t = jnp.asarray(w2, jnp.float32).T          # [H, H]
    b1c = jnp.asarray(b1, jnp.float32).reshape(H, 1)
    b2c = jnp.asarray(b2, jnp.float32).reshape(H, 1)
    w3c = jnp.asarray(w3, jnp.float32).reshape(H, 1)
    b3c = jnp.asarray(b3, jnp.float32).reshape(1, 1)

    # Lane-align the batch extent only (<=127 wasted lanes).  The pad copy is
    # skipped entirely when B is already a multiple of 128 (the common case
    # for large batches), so there is no extra HBM pass.
    b_al = _round_up(B, 128)
    if b_al != B:
        xt = jnp.pad(xt, ((0, 0), (0, b_al - B)))

    # Batch tile: force a multiple of 128 (hard lowering requirement) and cap
    # at 32768 so the per-step working set (~384*tb bytes) fits the scoped
    # VMEM budget on v5e/v6e/v7x.
    tb = min(max(128, (max_batch_tile // 128) * 128), 32768)
    tb = min(tb, b_al)

    grid = (pl.cdiv(b_al, tb),)   # partial last tile handled by block clipping

    kernel = functools.partial(rnd_kernel, bf16_matmul=bf16_matmul)

    out_t = pl.pallas_call(
        kernel,
        out_shape=jax.ShapeDtypeStruct((1, b_al), jnp.float32),
        grid=grid,
        in_specs=[
            pl.BlockSpec((F, tb), lambda i: (0, i)),   # x: streamed per tile
            pl.BlockSpec((H, F), lambda i: (0, 0)),    # weights/biases resident
            pl.BlockSpec((H, 1), lambda i: (0, 0)),
            pl.BlockSpec((H, H), lambda i: (0, 0)),
            pl.BlockSpec((H, 1), lambda i: (0, 0)),
            pl.BlockSpec((H, 1), lambda i: (0, 0)),
            pl.BlockSpec((1, 1), lambda i: (0, 0)),
        ],
        out_specs=pl.BlockSpec((1, tb), lambda i: (0, i)),
        compiler_params=pltpu.CompilerParams(
            dimension_semantics=("parallel",),   # shards tiles over v7x's 2 TCs
            vmem_limit_bytes=32 * 1024 * 1024,   # headroom for tb up to 32768
        ),
    )(xt, w1t, b1c, w2t, b2c, w3c, b3c)

    return out_t[:, :B]                           # [1, B]


def rnd_forward(x, params, *, max_batch_tile=16384, bf16_matmul=True):
    """Convenience wrapper for PyTorch-layout inputs.

    x: [B, info_per_state] float32.  Returns [B, 1] float32.
    Note: this performs one [B,F]->[F,B] relayout in XLA; producers that
    already hold feature-major activations should call rnd_forward_t directly
    to avoid the extra HBM pass.
    """
    x = jnp.asarray(x, jnp.float32)
    B = x.shape[0]
    out_t = rnd_forward_t(x.T, params, max_batch_tile=max_batch_tile,
                          bf16_matmul=bf16_matmul)
    return out_t.reshape(B, 1)


def init_rnd_params(key, info_per_state=2, nb_neurons=32):
    """Deterministic init mimicking PyTorch nn.Linear default
    (U[-1/sqrt(fan_in), 1/sqrt(fan_in)]).  Weights stored as [in, out]."""
    ks = jax.random.split(key, 6)

    def linear(kw, kb, fan_in, fan_out):
        bound = 1.0 / jnp.sqrt(fan_in)
        w = jax.random.uniform(kw, (fan_in, fan_out), jnp.float32, -bound, bound)
        b = jax.random.uniform(kb, (fan_out,), jnp.float32, -bound, bound)
        return w, b

    w1, b1 = linear(ks[0], ks[1], info_per_state, nb_neurons)
    w2, b2 = linear(ks[2], ks[3], nb_neurons, nb_neurons)
    w3, b3 = linear(ks[4], ks[5], nb_neurons, 1)
    return {"w1": w1, "b1": b1, "w2": w2, "b2": b2, "w3": w3, "b3": b3}


def rnd_reference(x, p):
    """Plain-JAX f32 reference (mirrors the PyTorch forward)."""
    h1 = jnp.maximum(x @ p["w1"] + p["b1"], 0.0)
    h2 = jnp.maximum(h1 @ p["w2"] + p["b2"], 0.0)
    return h2 @ p["w3"] + p["b3"]


if __name__ == "__main__":
    key = jax.random.PRNGKey(0)
    k_param, k_x, k_big = jax.random.split(key, 3)

    info_per_state = 2
    nb_neurons = 32
    batch = 8

    params = init_rnd_params(k_param, info_per_state, nb_neurons)
    x = jax.random.normal(k_x, (batch, info_per_state), dtype=jnp.float32)
    ref = rnd_reference(x, params)

    # 1) Exact-f32 path matches the PyTorch semantics tightly.
    out_f32 = jax.block_until_ready(rnd_forward(x, params, bf16_matmul=False))
    assert out_f32.shape == (batch, 1), out_f32.shape
    assert jnp.allclose(out_f32, ref, atol=1e-5, rtol=1e-5), (out_f32, ref)

    # 2) Default perf path (single-pass bf16 MXU matmul, f32 accumulation).
    out = jax.block_until_ready(rnd_forward(x, params))
    assert out.shape == (batch, 1), out.shape
    assert jnp.allclose(out, ref, atol=1e-2, rtol=1e-2), (out, ref)

    # 3) Multi-tile, non-128-aligned batch via the feature-major entry point
    #    (exercises the cdiv grid + clipped last tile).
    x_big = jax.random.normal(k_big, (300, info_per_state), dtype=jnp.float32)
    out_big = jax.block_until_ready(
        rnd_forward_t(x_big.T, params, max_batch_tile=256))
    assert out_big.shape == (1, 300), out_big.shape
    ref_big = rnd_reference(x_big, params)
    assert jnp.allclose(out_big, ref_big.T, atol=1e-2, rtol=1e-2)

    print("KERNEL_OK")
</pallas_src>

<mosaic_0001>
module attributes {stable_mosaic.version = 11 : i64} {
  func.func @rnd_kernel(%arg0: i32, %arg1: memref<2x128xf32, #tpu.memory_space<vmem>>, %arg2: memref<32x2xf32, #tpu.memory_space<vmem>>, %arg3: memref<32x1xf32, #tpu.memory_space<vmem>>, %arg4: memref<32x32xf32, #tpu.memory_space<vmem>>, %arg5: memref<32x1xf32, #tpu.memory_space<vmem>>, %arg6: memref<32x1xf32, #tpu.memory_space<vmem>>, %arg7: memref<1x1xf32, #tpu.memory_space<vmem>>, %arg8: memref<1x128xf32, #tpu.memory_space<vmem>>) attributes {dimension_semantics = [#tpu.dimension_semantics<parallel>], iteration_bounds = array<i64: 1>, scalar_prefetch = 0 : i64, scratch_operands = 0 : i64, tpu.core_type = #tpu.core_type<tc>, window_params = [{transform_indices = @transform_0, window_bounds = array<i64: 2, 128>}, {pipeline_mode = #tpu.pipeline_mode<synchronous>, transform_indices = @transform_1, window_bounds = array<i64: 32, 2>}, {pipeline_mode = #tpu.pipeline_mode<synchronous>, transform_indices = @transform_2, window_bounds = array<i64: 32, 1>}, {pipeline_mode = #tpu.pipeline_mode<synchronous>, transform_indices = @transform_3, window_bounds = array<i64: 32, 32>}, {pipeline_mode = #tpu.pipeline_mode<synchronous>, transform_indices = @transform_4, window_bounds = array<i64: 32, 1>}, {pipeline_mode = #tpu.pipeline_mode<synchronous>, transform_indices = @transform_5, window_bounds = array<i64: 32, 1>}, {pipeline_mode = #tpu.pipeline_mode<synchronous>, transform_indices = @transform_6, window_bounds = array<i64: 1, 1>}, {transform_indices = @transform_7, window_bounds = array<i64: 1, 128>}]} {
    %c0 = arith.constant 0 : index
    %c0_0 = arith.constant 0 : index
    %0 = vector.load %arg1[%c0, %c0_0] : memref<2x128xf32, #tpu.memory_space<vmem>>, vector<2x128xf32>
    %c0_1 = arith.constant 0 : index
    %c0_2 = arith.constant 0 : index
    %1 = vector.load %arg2[%c0_1, %c0_2] : memref<32x2xf32, #tpu.memory_space<vmem>>, vector<32x2xf32>
    %2 = vector.extract_strided_slice %1 {offsets = [0, 0], sizes = [32, 1], strides = [1, 1]} : vector<32x2xf32> to vector<32x1xf32>
    %3 = vector.extract_strided_slice %0 {offsets = [0, 0], sizes = [1, 128], strides = [1, 1]} : vector<2x128xf32> to vector<1x128xf32>
    %4 = vector.broadcast %2 : vector<32x1xf32> to vector<32x128xf32>
    %5 = vector.broadcast %3 : vector<1x128xf32> to vector<32x128xf32>
    %6 = arith.mulf %4, %5 : vector<32x128xf32>
    %c0_3 = arith.constant 0 : index
    %c0_4 = arith.constant 0 : index
    %7 = vector.load %arg3[%c0_3, %c0_4] : memref<32x1xf32, #tpu.memory_space<vmem>>, vector<32x1xf32>
    %8 = vector.broadcast %7 : vector<32x1xf32> to vector<32x128xf32>
    %9 = arith.addf %6, %8 : vector<32x128xf32>
    %10 = vector.extract_strided_slice %1 {offsets = [0, 1], sizes = [32, 1], strides = [1, 1]} : vector<32x2xf32> to vector<32x1xf32>
    %11 = vector.extract_strided_slice %0 {offsets = [1, 0], sizes = [1, 128], strides = [1, 1]} : vector<2x128xf32> to vector<1x128xf32>
    %12 = vector.broadcast %10 : vector<32x1xf32> to vector<32x128xf32>
    %13 = vector.broadcast %11 : vector<1x128xf32> to vector<32x128xf32>
    %14 = arith.mulf %12, %13 : vector<32x128xf32>
    %15 = arith.addf %9, %14 : vector<32x128xf32>
    %cst = arith.constant 0.000000e+00 : f32
    %16 = vector.broadcast %cst : f32 to vector<32x128xf32>
    %17 = arith.maximumf %15, %16 : vector<32x128xf32>
    %c0_5 = arith.constant 0 : index
    %c0_6 = arith.constant 0 : index
    %18 = vector.load %arg4[%c0_5, %c0_6] : memref<32x32xf32, #tpu.memory_space<vmem>>, vector<32x32xf32>
    %cst_7 = arith.constant dense<0.000000e+00> : vector<32x128xf32>
    %19 = tpu.matmul %18, %17, %cst_7 {dimension_numbers = #tpu.dot_dimension_numbers<[1], [0], [0], [1], [0, 0, 1, 1], [], []>} : vector<32x32xf32>, vector<32x128xf32>, vector<32x128xf32> -> vector<32x128xf32>
    %c0_8 = arith.constant 0 : index
    %c0_9 = arith.constant 0 : index
    %20 = vector.load %arg5[%c0_8, %c0_9] : memref<32x1xf32, #tpu.memory_space<vmem>>, vector<32x1xf32>
    %21 = vector.broadcast %20 : vector<32x1xf32> to vector<32x128xf32>
    %22 = arith.addf %19, %21 : vector<32x128xf32>
    %cst_10 = arith.constant 0.000000e+00 : f32
    %23 = vector.broadcast %cst_10 : f32 to vector<32x128xf32>
    %24 = arith.maximumf %22, %23 : vector<32x128xf32>
    %c0_11 = arith.constant 0 : index
    %c0_12 = arith.constant 0 : index
    %25 = vector.load %arg6[%c0_11, %c0_12] : memref<32x1xf32, #tpu.memory_space<vmem>>, vector<32x1xf32>
    %26 = vector.broadcast %25 : vector<32x1xf32> to vector<32x128xf32>
    %27 = arith.mulf %24, %26 : vector<32x128xf32>
    %cst_13 = arith.constant dense<0.000000e+00> : vector<128xf32>
    %28 = vector.multi_reduction <add>, %27, %cst_13 [0] : vector<32x128xf32> to vector<128xf32>
    %29 = vector.shape_cast %28 : vector<128xf32> to vector<1x128xf32>
    %c0_14 = arith.constant 0 : index
    %c0_15 = arith.constant 0 : index
    %30 = vector.load %arg7[%c0_14, %c0_15] : memref<1x1xf32, #tpu.memory_space<vmem>>, vector<1x1xf32>
    %31 = vector.broadcast %30 : vector<1x1xf32> to vector<1x128xf32>
    %32 = arith.addf %29, %31 : vector<1x128xf32>
    %c0_16 = arith.constant 0 : index
    %c0_17 = arith.constant 0 : index
    %33 = vector.load %arg8[%c0_16, %c0_17] : memref<1x128xf32, #tpu.memory_space<vmem>>, vector<1x128xf32>
    tpu.vector_store %arg8[%c0_16, %c0_17], %32 {strides = array<i32>} : memref<1x128xf32, #tpu.memory_space<vmem>>, vector<1x128xf32>,
    return
  }
  func.func @transform_0(%arg0: i32) -> (i32, i32) {
    %c0_i32 = arith.constant 0 : i32
    %c0_i32_0 = arith.constant 0 : i32
    return %c0_i32, %arg0 : i32, i32
  }
  func.func @transform_1(%arg0: i32) -> (i32, i32) {
    %c0_i32 = arith.constant 0 : i32
    %c0_i32_0 = arith.constant 0 : i32
    %c0_i32_1 = arith.constant 0 : i32
    return %c0_i32, %c0_i32_0 : i32, i32
  }
  func.func @transform_2(%arg0: i32) -> (i32, i32) {
    %c0_i32 = arith.constant 0 : i32
    %c0_i32_0 = arith.constant 0 : i32
    %c0_i32_1 = arith.constant 0 : i32
    return %c0_i32, %c0_i32_0 : i32, i32
  }
  func.func @transform_3(%arg0: i32) -> (i32, i32) {
    %c0_i32 = arith.constant 0 : i32
    %c0_i32_0 = arith.constant 0 : i32
    %c0_i32_1 = arith.constant 0 : i32
    return %c0_i32, %c0_i32_0 : i32, i32
  }
  func.func @transform_4(%arg0: i32) -> (i32, i32) {
    %c0_i32 = arith.constant 0 : i32
    %c0_i32_0 = arith.constant 0 : i32
    %c0_i32_1 = arith.constant 0 : i32
    return %c0_i32, %c0_i32_0 : i32, i32
  }
  func.func @transform_5(%arg0: i32) -> (i32, i32) {
    %c0_i32 = arith.constant 0 : i32
    %c0_i32_0 = arith.constant 0 : i32
    %c0_i32_1 = arith.constant 0 : i32
    return %c0_i32, %c0_i32_0 : i32, i32
  }
  func.func @transform_6(%arg0: i32) -> (i32, i32) {
    %c0_i32 = arith.constant 0 : i32
    %c0_i32_0 = arith.constant 0 : i32
    %c0_i32_1 = arith.constant 0 : i32
    return %c0_i32, %c0_i32_0 : i32, i32
  }
  func.func @transform_7(%arg0: i32) -> (i32, i32) {
    %c0_i32 = arith.constant 0 : i32
    %c0_i32_0 = arith.constant 0 : i32
    return %c0_i32, %arg0 : i32, i32
  }
}

</mosaic_0001>

<bundles_post_ra>
// kernel: tpu_custom_call.1
= control target key start
LH: loop header
LB: loop body
LE: loop exit
PB: predicated region body
PF: predicated region fallthrough
CT: control target
= control target key end

     0   :  { %s521_s0 = inlined_call_operand.vmem [shape: f32[2,128], index: 0, kind: input, shape index: {}]   ;;  %s522_s1 = inlined_call_operand.vmem [shape: f32[32,2], index: 1, kind: input, shape index: {}]   ;;  %s523_s2 = inlined_call_operand.vmem [shape: f32[32,1], index: 2, kind: input, shape index: {}]   ;;  %s524_s3 = inlined_call_operand.vmem [shape: f32[32,32], index: 3, kind: input, shape index: {}]   ;;  %s525_s4 = inlined_call_operand.vmem [shape: f32[32,1], index: 4, kind: input, shape index: {}]   ;;  %s526_s5 = inlined_call_operand.vmem [shape: f32[32,1], index: 5, kind: input, shape index: {}]   ;;  %s527_s6 = inlined_call_operand.<no memory space> [shape: f32[1,1], index: 6, kind: input, shape index: {}]   ;;  %s528_s7 = inlined_call_operand.hbm [shape: f32[1,128], index: 7, kind: output, shape index: {}]  }
   0x1   :  { %v12_v0 = vstv %s527_s6 }
   0x2   :  { %13 = vst [vmem:[#allocation2] sm:$0x1] %v12_v0 }
   0x3   :  { %v62_v1 = vld [vmem:[%s523_s2] sm:$0xff]  ;;  %v388_v3 = vmov 0   ;;  %v63_v4 = vld [vmem:[%s523_s2 + $0x8] sm:$0xff] }
   0x4   :  { %v30_v2 = vld [vmem:[%s522_s1] sm:$0xff]  ;;  %357 = vset.pattern.permute.xlu1 %v388_v3  ;;  %356 = vset.pattern.permute.xlu0 %v388_v3  ;;  %v31_v5 = vld [vmem:[%s522_s1 + $0x8] sm:$0xff] }
   0x5   :  { %68 = vperm.xlu1 %357, %v62_v1   ;;  %36 = vperm.xlu0 %356, %v30_v2  }
   0x6   :  { %14 = vsyncpa [#allocation4], 0  ;;  %v33_v6 = vld [vmem:[%s522_s1 + $0x18] sm:$0xff]  ;;  %v389_v7 = vmov 1   ;;  %v32_v8 = vld [vmem:[%s522_s1 + $0x10] sm:$0xff]  ;;  %vm150_vm0 = vcmask 261120   ;;  %v54_v22 = vlaneseq }
   0x7   :  { %v64_v9 = vld [vmem:[%s523_s2 + $0x10] sm:$0xff]  ;;  %v65_v10 = vld [vmem:[%s523_s2 + $0x18] sm:$0xff]  ;;  %v122_v11 = vld [vmem:[%s524_s3] sm:$0xff] }
   0x8   :  { %v124_v12 = vld [vmem:[%s524_s3 + $0x10] sm:$0xff]  ;;  %335 = vmatprep.mubr.msk.f32.mxu0 %vm150_vm0, %v122_v11  ;;  %v126_v13 = vld [vmem:[%s525_s4] sm:$0xff]  ;;  %v127_v14 = vld [vmem:[%s525_s4 + $0x8] sm:$0xff]  ;;  %v490_v23 = vshrl.u32 %v54_v22, 7 }
   0x9   :  { %73 = vperm.xlu1 %357, %v63_v4   ;;  %41 = vperm.xlu0 %356, %v31_v5   ;;  %v128_v15 = vld [vmem:[%s525_s4 + $0x10] sm:$0xff]  ;;  %v252_v16 = vld [vmem:[%s526_s5] sm:$0xff]  ;;  %v129_v17 = vld [vmem:[%s525_s4 + $0x18] sm:$0xff] }
   0xa   :  { %338 = vmatprep.mubr.msk.f32.mxu1 %vm150_vm0, %v124_v12  ;;  %v254_v18 = vld [vmem:[%s526_s5 + $0x10] sm:$0xff]  ;;  %v253_v19 = vld [vmem:[%s526_s5 + $0x8] sm:$0xff]  ;;  %v289_v20 = vld [vmem:[#allocation2] sm:$0x1]  ;;  %v56_v26 = vsub.s32 0, %v490_v23  ;;  %v108_v27 = vsub.s32 1, %v490_v23 }
   0xb   :  { %v255_v21 = vld [vmem:[%s526_s5 + $0x18] sm:$0xff]  ;;  %v29_v28 = vld [vmem:[%s521_s0] sm:$0x3]  ;;  %v123_v63 = vld [vmem:[%s524_s3 + $0x8] sm:$0xff] }
   0xc   :  { %v57_v31 = vrot.slane %v29_v28, %v56_v26  ;;  %v109_v32 = vrot.slane %v29_v28, %v108_v27  ;;  %v125_v0 = vld [vmem:[%s524_s3 + $0x18] sm:$0xff]  ;;  %s390_s3 = smov [#allocation3]  }
   0xd   :  { %358 = vset.pattern.permute.xlu1 %v389_v7  ;;  %51 = vperm.xlu0 %356, %v33_v6   ;;  %s307_s15 = sshll.u32 %s390_s3, 4  ;;  %s308_s15 = int_to_ptr.vmem [resolvable:$true] %s307_s15 }
   0xe   :  { %95 = vperm.xlu1 %358, %v31_v5   ;;  %s364_s16 = scalar_lea.vmem %s308_s15, 16  ;;  %s368_s17 = scalar_lea.vmem %s308_s15, 32 }
   0xf   :  { %p365_p0 = scmp.ne.s32.totalorder %s308_s15, %s364_s16  ;;  %p369_p1 = scmp.lt.s32.totalorder %s308_s15, %s308_s15 }
  0x10   :  { %p370_p2 = scmp.lt.s32.totalorder %s368_s17, %s364_s16 }
  0x11   :  { %360 = vset.pattern.permute.xlu0 %v389_v7 }
  0x12   :  { %359 = vset.pattern.permute.xlu1 %v388_v3  ;;  %91 = vperm.xlu0 %360, %v30_v2   ;;  %p371_p3 = por %p370_p2, %p369_p1 }
  0x13   :  { %46 = vperm.xlu1 %359, %v32_v8  }
  0x14   :  { %p372_p4 = pnand %p371_p3, %p365_p0 }
  0x16   :  { %99 = vperm.xlu0 %360, %v32_v8  }
  0x17   :  { %78 = vperm.xlu1 %359, %v64_v9  }
  0x1a   :  { %363 = vset.pattern.permute.xlu0 %v388_v3 }
  0x1b   :  { %83 = vperm.xlu1 %359, %v65_v10   ;;  %137 = vperm.xlu0 %363, %v127_v14  }
  0x1f   :  { %361 = vset.pattern.permute.xlu1 %v389_v7  ;;  %258 = vperm.xlu0 %363, %v252_v16  }
  0x20   :  { %103 = vperm.xlu1 %361, %v33_v6  }
  0x23   :  { %268 = vperm.xlu0 %363, %v254_v18  }
  0x24   :  { %362 = vset.pattern.permute.xlu1 %v388_v3 }
  0x25   :  { %132 = vperm.xlu1 %362, %v126_v13  }
  0x27   :  { %292 = vperm.xlu0 %363, %v289_v20  }
  0x29   :  { %142 = vperm.xlu1 %362, %v128_v15  }
  0x2d   :  { %147 = vperm.xlu1 %362, %v129_v17  }
  0x31   :  { %263 = vperm.xlu1 %362, %v253_v19  }
  0x35   :  { %273 = vperm.xlu1 %362, %v255_v21  }
  0x84   :  { %v69_v24 = vpop.permute.xlu1 %68  ;;  %v37_v25 = vpop.permute.xlu0 %36 }
  0x85   :  { %v58_v36 = vmul.f32 %v57_v31, %v37_v25 }
  0x87   :  { %v86_v40 = vadd.f32 %v69_v24, %v58_v36 }
  0x88   :  { %v74_v29 = vpop.permute.xlu1 %73  ;;  %v42_v30 = vpop.permute.xlu0 %41 }
  0x89   :  { %v59_v33 = vmul.f32 %v57_v31, %v42_v30 }
  0x8b   :  { %v87_v38 = vadd.f32 %v74_v29, %v59_v33 }
  0x8c   :  { %v52_v34 = vpop.permute.xlu0 %51 }
  0x8d   :  { %v96_v35 = vpop.permute.xlu1 %95  ;;  %v61_v54 = vmul.f32 %v57_v31, %v52_v34 }
  0x8e   :  { %v111_v37 = vmul.f32 %v109_v32, %v96_v35 }
  0x90   :  { %v115_v41 = vadd.f32 %v111_v37, %v87_v38 }
  0x91   :  { %v92_v39 = vpop.permute.xlu0 %91 }
  0x92   :  { %v110_v42 = vmul.f32 %v109_v32, %v92_v39  ;;  %v47_v43 = vpop.permute.xlu1 %46  ;;  %v119_v45 = vmax.f32 %v115_v41, 0.0 }
  0x93   :  { %v60_v50 = vmul.f32 %v57_v31, %v47_v43 }
  0x94   :  { %v114_v44 = vadd.f32 %v110_v42, %v86_v40 }
  0x95   :  { %v100_v49 = vpop.permute.xlu0 %99 }
  0x96   :  { %v118_v46 = vmax.f32 %v114_v44, 0.0  ;;  %v79_v47 = vpop.permute.xlu1 %78  ;;  %v112_v53 = vmul.f32 %v109_v32, %v100_v49 }
  0x97   :  { %v88_v52 = vadd.f32 %v79_v47, %v60_v50 }
  0x98   :  { %v341_v48 = vpack.c.bf16 %v119_v45, %v118_v46 }
  0x99   :  { %v116_v56 = vadd.f32 %v112_v53, %v88_v52 }
  0x9a   :  { %v84_v51 = vpop.permute.xlu1 %83  ;;  %342 = vmatprep.subr.bf16.mxu0 %v341_v48  ;;  %349 = vmatprep.subr.bf16.mxu1 %v341_v48  ;;  %v138_v3 = vpop.permute.xlu0 %137 }
  0x9b   :  { %344 = vmatpush3.bf16.msra.mxu0 %v341_v48  ;;  %351 = vmatpush3.bf16.msra.mxu1 %v341_v48  ;;  %v89_v57 = vadd.f32 %v84_v51, %v61_v54  ;;  %v120_v60 = vmax.f32 %v116_v56, 0.0 }
  0x9e   :  { %v259_v5 = vpop.permute.xlu0 %258 }
  0x9f   :  { %v104_v55 = vpop.permute.xlu1 %103 }
  0xa0   :  { %v113_v58 = vmul.f32 %v109_v32, %v104_v55 }
  0xa2   :  { %v117_v59 = vadd.f32 %v113_v58, %v89_v57  ;;  %v269_v21 = vpop.permute.xlu0 %268 }
  0xa4   :  { %v121_v61 = vmax.f32 %v117_v59, 0.0  ;;  %v133_v1 = vpop.permute.xlu1 %132 }
  0xa6   :  { %v345_v62 = vpack.c.bf16 %v121_v61, %v120_v60  ;;  %v293_v34 = vpop.permute.xlu0 %292 }
  0xa7   :  { %v298_v36 = vrot.slane %v293_v34, %v56_v26 }
  0xa8   :  { %346 = vmatprep.subr.bf16.mxu0 %v345_v62  ;;  %350 = vmatprep.subr.bf16.mxu1 %v345_v62  ;;  %v143_v2 = vpop.permute.xlu1 %142 }
  0xa9   :  { %348 = vmatpush3.bf16.msra.mxu0 %v345_v62  ;;  %352 = vmatpush3.bf16.msra.mxu1 %v345_v62 }
  0xac   :  { %336 = vmatmul.mubr.msk.f32.vlgmr.msra.gmra.mrb[0].mxu0 %vm150_vm0, %v123_v63  ;;  %339 = vmatmul.mubr.msk.f32.vlgmr.msra.gmra.mrb[0].mxu1 %vm150_vm0, %v125_v0  ;;  %v148_v4 = vpop.permute.xlu1 %147 }
  0xb0   :  { %v264_v14 = vpop.permute.xlu1 %263 }
  0xb4   :  { %v274_v25 = vpop.permute.xlu1 %273 }
 0x17f   :  { %v337_v6 = vpop.f32.mrb[0].mxu0  ;;  %v340_v7 = vpop.f32.mrb[0].mxu1 }
 0x180   :  { %v235_v8 = vadd.f32 %v337_v6, %v138_v3  ;;  %v229_v9 = vpop.f32.mrb[1].mxu0  ;;  %v239_v10 = vpop.f32.mrb[1].mxu1  ;;  %v245_v11 = vadd.f32 %v340_v7, %v148_v4 }
 0x181   :  { %v230_v12 = vadd.f32 %v229_v9, %v133_v1  ;;  %v240_v13 = vadd.f32 %v239_v10, %v143_v2 }
 0x182   :  { %v249_v15 = vmax.f32 %v235_v8, 0.0  ;;  %v251_v19 = vmax.f32 %v245_v11, 0.0 }
 0x183   :  { %v248_v16 = vmax.f32 %v230_v12, 0.0  ;;  %v250_v17 = vmax.f32 %v240_v13, 0.0 }
 0x184   :  { %v277_v18 = vmul.f32 %v264_v14, %v249_v15  ;;  %v279_v27 = vmul.f32 %v274_v25, %v251_v19 }
 0x185   :  { %v276_v20 = vmul.f32 %v259_v5, %v248_v16  ;;  %v278_v24 = vmul.f32 %v269_v21, %v250_v17 }
 0x187   :  { %v280_v22 = vadd.f32 %v277_v18, %v276_v20 }
 0x189   :  { %v281_v28 = vadd.f32 %v280_v22, %v278_v24 }
 0x18b   :  { %v282_v29 = vadd.f32 %v281_v28, %v279_v27 }
 0x18d   :  { %v283_v30 = vrot.slane %v282_v29, 4 }
 0x18f   :  { %v284_v31 = vadd.f32 %v283_v30, %v282_v29 }
 0x191   :  { %v285_v32 = vrot.slane %v284_v31, 2 }
 0x193   :  { %v286_v33 = vadd.f32 %v285_v32, %v284_v31 }
 0x195   :  { %v287_v35 = vrot.slane %v286_v33, 1 }
 0x197   :  { %v288_v37 = vadd.f32 %v287_v35, %v286_v33 }
 0x199   :  { %v299_v38 = vadd.f32 %v298_v36, %v288_v37 }
 0x19b   :  { %300 = vst [vmem:[#allocation3] sm:$0x1] %v299_v38 }
 0x19c   :  { %375 = shalt.err (!%p372_p4)
}
 0x19d   :  { %s376_s19 = scalar_lea.hbm %s528_s7, 16 }
 0x19e   :  { %p377_p5 = scmp.ne.s32.totalorder %s528_s7, %s376_s19  ;;  %p380_p6 = scmp.lt.u32.totalorder %s376_s19, %s528_s7 }
 0x1a0   :  { %p382_p7 = pnand %p380_p6, %p377_p5 }
 0x1a2   :  { %385 = shalt.err (!%p382_p7)
}
 0x1a3   :  { %310 = dma.vmem_to_hbm [thread:$0]  %s308_s15, 16, %s528_s7, [#allocation4]  }
 0x1a4   :  { %386 = dma.done.wait [#allocation4], 16  }
 0x1a5   :  { %387 = vsyncadd [#allocation4], 4294967280 }
 0x1a6   :  { %314 = vsyncpa [#allocation4], 1 }

</bundles_post_ra>
